<compile_context>
chip_gen: v6e
topology: v6e:2x2x1
jax: 0.10.0
libtpu: 0.0.40
codegen_flags: <defaults>
</compile_context>

<pallas_src>
import functools

import jax
import jax.numpy as jnp
from jax import lax
from jax.experimental import pallas as pl
from jax.experimental.pallas import tpu as pltpu


_LANES = 128      # vreg lane width: per-lane online-softmax accumulators
_TN_MAX = 16384   # cap on the streamed gallery tile (bounds unrolled lane-block loop)


def _round_up(x: int, m: int) -> int:
    return -(-x // m) * m


def _infonce_kernel(x_ref, f_ref, m_out, se_out, m_sc, se_sc, *,
                    inv_temp: float, nb: int):
    j = pl.program_id(1)          # streaming reduction over gallery tiles

    @pl.when(j == 0)
    def _init():
        m_sc[...] = jnp.full(m_sc.shape, -jnp.inf, dtype=m_sc.dtype)
        se_sc[...] = jnp.zeros(se_sc.shape, dtype=se_sc.dtype)

    # (B, tn) logits: contract dim 1 of BOTH operands (no per-tile transpose);
    # bf16 (or f32) operands with f32 MXU accumulation.
    logits = lax.dot_general(
        x_ref[...], f_ref[...],
        dimension_numbers=(((1,), (1,)), ((), ())),
        preferred_element_type=jnp.float32) * inv_temp

    # Per-lane (width-128) online softmax: only elementwise VPU max/add and EUP
    # exp in the steady-state loop -- no cross-lane XLU reductions and no
    # (B, 1) -> (B, tn) lane broadcasts per grid step.  Static 128-aligned lane
    # slices map exactly to vreg columns (no relayout).
    m_run = m_sc[...]
    se_run = se_sc[...]

    m_tile = logits[:, 0:_LANES]
    for k in range(1, nb):
        m_tile = jnp.maximum(m_tile, logits[:, k * _LANES:(k + 1) * _LANES])
    m_new = jnp.maximum(m_run, m_tile)

    se_new = se_run * jnp.exp(m_run - m_new)
    for k in range(nb):
        se_new = se_new + jnp.exp(logits[:, k * _LANES:(k + 1) * _LANES] - m_new)

    m_sc[...] = m_new
    se_sc[...] = se_new

    @pl.when(j == pl.num_programs(1) - 1)
    def _finalize():
        # Lane-dense (last dim = 128) single writeback per split.
        m_out[...] = m_new[None]
        se_out[...] = se_new[None]


def _vmem_capacity_bytes() -> int:
    try:
        return int(pltpu.get_tpu_info().vmem_capacity_bytes)
    except Exception:
        return 64 << 20    # conservative fallback (v7x per-TensorCore VMEM)


def _default_num_splits() -> int:
    # One gallery split per TensorCore: v7x has 2 TCs/chip, v5e/v6e have 1.
    try:
        kind = jax.devices()[0].device_kind.lower()
    except Exception:
        return 1
    return 2 if "v7" in kind else 1


def _plan_tiles(N: int, B: int, D: int, bpe: int, num_splits: int):
    """Generation-aware gallery tile (tn), grid and vmem_limit selection."""
    vmem_cap = _vmem_capacity_bytes()
    # ~75% of physical VMEM: ~96 MiB on v5e/v6e (128 MiB), ~48 MiB on v7x (64 MiB).
    limit_cap = int(vmem_cap * 0.75)

    # tn-independent VMEM: resident query block (counted generously), the two
    # (B, 128) accumulators, double-buffered (1, B, 128) output blocks, plus
    # compiler internal-scratch headroom.
    fixed = 2 * B * D * bpe + 6 * B * _LANES * 4 + (4 << 20)
    # Per gallery column: double-buffered streamed feature tile + the (B, tn)
    # f32 logits intermediate (counted twice for exp temporaries).
    per_col = 2 * D * bpe + 2 * B * 4

    avail = max(limit_cap - fixed, per_col * _LANES)
    tn = max(_LANES, (avail // per_col) // _LANES * _LANES)
    n_ps = -(-N // num_splits)                       # gallery rows per split
    tn = min(tn, _TN_MAX, _round_up(n_ps, _LANES))
    # Distribute the (padded) split evenly over cdiv(n_ps, tn) tiles so the
    # tail tile is not mostly zero padding.
    n_blocks = -(-n_ps // tn)
    tn = _round_up(-(-n_ps // n_blocks), _LANES)
    n_pad = num_splits * n_blocks * tn

    need = fixed + per_col * tn
    vmem_limit = int(min(max(need, 32 << 20), limit_cap))
    return tn, n_blocks, n_pad, vmem_limit


def infonce_loss(inputs, features, indexes, *, temp: float = 0.05,
                 num_splits=None, compute_dtype=jnp.bfloat16):
    """inputs: (B, D), features: (N, D), indexes: (B,) int -> scalar f32 loss."""
    B, D = inputs.shape
    N, D2 = features.shape
    assert D == D2
    inv_temp = 1.0 / float(temp)

    if num_splits is None:
        num_splits = _default_num_splits()
    num_splits = max(1, int(num_splits))

    bpe = jnp.dtype(compute_dtype).itemsize
    tn, n_blocks, n_pad, vmem_limit = _plan_tiles(N, B, D, bpe, num_splits)
    n_extra = n_pad - N

    x = inputs.astype(compute_dtype)
    f = features.astype(compute_dtype)
    if n_extra:
        # Zero-pad the gallery so any N works with a large 128-aligned tn; each
        # padded column contributes exactly exp(0 - m) to the denominator and
        # is subtracted back out in the epilogue.
        f = jnp.pad(f, ((0, n_extra), (0, 0)))

    kernel = functools.partial(_infonce_kernel, inv_temp=inv_temp,
                               nb=tn // _LANES)

    part_shape = jax.ShapeDtypeStruct((num_splits, B, _LANES), jnp.float32)
    part_spec = pl.BlockSpec((1, B, _LANES), lambda s, j: (s, 0, 0))

    def _call(resident: bool):
        if resident:
            # Whole-array VMEM placement: single buffer for a block that never
            # changes across the grid (frees VMEM for a larger gallery tile).
            x_spec = pl.BlockSpec(memory_space=pltpu.MemorySpace.VMEM)
        else:
            x_spec = pl.BlockSpec((B, D), lambda s, j: (0, 0))
        return pl.pallas_call(
            kernel,
            out_shape=(part_shape, part_shape),
            grid_spec=pltpu.PrefetchScalarGridSpec(
                num_scalar_prefetch=0,
                grid=(num_splits, n_blocks),
                in_specs=[
                    x_spec,                                      # queries (resident)
                    # Streamed gallery tile.
                    # TODO(synk): sweep pipeline_mode=pl.Buffered(3) here on v7x
                    # at small-tn operating points.
                    pl.BlockSpec((tn, D), lambda s, j: (s * n_blocks + j, 0)),
                ],
                out_specs=[part_spec, part_spec],
                scratch_shapes=[pltpu.VMEM((B, _LANES), jnp.float32)] * 2,
            ),
            compiler_params=pltpu.CompilerParams(
                dimension_semantics=("parallel", "arbitrary"),
                vmem_limit_bytes=vmem_limit),
        )(x, f)

    try:
        m_p, se_p = _call(resident=True)
    except Exception:
        # TODO(synk): drop this fallback once unblocked-VMEM operand specs are
        # guaranteed; a blocked constant-index spec is functionally identical
        # (it just double-buffers the resident query block).
        m_p, se_p = _call(resident=False)

    # Target logit: gather the B target rows once in the wrapper (removes the
    # per-element one-hot compare/select path from the streaming loop).  Same
    # compute_dtype rounding as the kernel's matmul, f32 accumulation.
    f_tgt = jnp.take(features, indexes.astype(jnp.int32), axis=0)
    tgt_logit = jnp.sum(
        x.astype(jnp.float32) * f_tgt.astype(compute_dtype).astype(jnp.float32),
        axis=1) * inv_temp                                                # (B,)

    # Tiny JAX epilogue: combine per-split, per-lane partial accumulators
    # (single 128->1 reduction), remove the padded-column contributions, NLL.
    m = jnp.max(m_p, axis=(0, 2))                                         # (B,)
    se = jnp.sum(se_p * jnp.exp(m_p - m[None, :, None]), axis=(0, 2))     # (B,)
    if n_extra:
        se = jnp.maximum(se - n_extra * jnp.exp(-m), 0.0)
    # eps * exp(-m) keeps this algebraically identical to
    #   exp(l_t) / (sum_j exp(l_j) + 1e-6)   wherever the reference is finite.
    p_tgt = jnp.exp(tgt_logit - m) / (se + 1e-6 * jnp.exp(-m))
    return jnp.mean(-jnp.log(p_tgt + 1e-6))


def _infonce_ref(inputs, features, indexes, temp=0.05):
    logits = jnp.matmul(inputs, features.T, precision=lax.Precision.HIGHEST) / temp
    exps = jnp.exp(logits)
    p = exps / (exps.sum(axis=1, keepdims=True) + 1e-6)
    p_tgt = p[jnp.arange(inputs.shape[0]), indexes]
    return jnp.mean(-jnp.log(p_tgt + 1e-6))


if __name__ == "__main__":
    # Small deterministic shapes: batch B=8, hidden D=32, num_samples N=64.
    B, D, N = 8, 32, 64
    key = jax.random.PRNGKey(0)
    k1, k2, k3 = jax.random.split(key, 3)

    # Modest magnitudes keep the *reference's* un-stabilized exp finite
    # (the kernel itself is stabilized via a per-lane online max).
    inputs = jax.random.normal(k1, (B, D), dtype=jnp.float32) * 0.1
    features = jax.random.normal(k2, (N, D), dtype=jnp.float32)
    features = features / jnp.linalg.norm(features, axis=1, keepdims=True)
    indexes = jax.random.randint(k3, (B,), 0, N, dtype=jnp.int32)

    ref_f32 = _infonce_ref(inputs, features, indexes, temp=0.05)

    # 1) f32 streaming path vs the pure-f32 reference.
    loss_f32 = infonce_loss(inputs, features, indexes, temp=0.05,
                            compute_dtype=jnp.float32)
    jax.block_until_ready(loss_f32)
    assert jnp.allclose(loss_f32, ref_f32, rtol=1e-3, atol=1e-3), (loss_f32, ref_f32)

    # 2) Production bf16-streaming path vs a reference with the same bf16
    #    rounding of the operands, plus a loose sanity check vs pure f32.
    loss_bf16 = infonce_loss(inputs, features, indexes, temp=0.05,
                             compute_dtype=jnp.bfloat16)
    jax.block_until_ready(loss_bf16)
    xb = inputs.astype(jnp.bfloat16).astype(jnp.float32)
    fb = features.astype(jnp.bfloat16).astype(jnp.float32)
    ref_bf16 = _infonce_ref(xb, fb, indexes, temp=0.05)
    assert jnp.allclose(loss_bf16, ref_bf16, rtol=1e-3, atol=1e-3), (loss_bf16, ref_bf16)
    assert jnp.allclose(loss_bf16, ref_f32, rtol=5e-2, atol=5e-2), (loss_bf16, ref_f32)

    # 3) Explicit 2-way split (megacore / v7x path) must agree with the default.
    loss_split = infonce_loss(inputs, features, indexes, temp=0.05,
                              num_splits=2, compute_dtype=jnp.bfloat16)
    jax.block_until_ready(loss_split)
    assert jnp.allclose(loss_split, loss_bf16, rtol=1e-4, atol=1e-4), (loss_split, loss_bf16)

    print("KERNEL_OK")
</pallas_src>

<mosaic_0001>
module attributes {stable_mosaic.version = 11 : i64} {
  func.func @_infonce_kernel(%arg0: i32, %arg1: i32, %arg2: memref<8x32xf32, #tpu.memory_space<vmem>>, %arg3: memref<128x32xf32, #tpu.memory_space<vmem>>, %arg4: memref<1x8x128xf32, #tpu.memory_space<vmem>>, %arg5: memref<1x8x128xf32, #tpu.memory_space<vmem>>, %arg6: memref<8x128xf32, #tpu.memory_space<vmem>>, %arg7: memref<8x128xf32, #tpu.memory_space<vmem>>) attributes {dimension_semantics = [#tpu.dimension_semantics<parallel>, #tpu.dimension_semantics<arbitrary>], iteration_bounds = array<i64: 1, 1>, scalar_prefetch = 0 : i64, scratch_operands = 2 : i64, tpu.core_type = #tpu.core_type<tc>, window_params = [{pipeline_mode = #tpu.pipeline_mode<synchronous>, transform_indices = @transform_0, window_bounds = array<i64: 8, 32>}, {transform_indices = @transform_1, window_bounds = array<i64: 128, 32>}, {transform_indices = @transform_2, window_bounds = array<i64: 1, 8, 128>}, {transform_indices = @transform_3, window_bounds = array<i64: 1, 8, 128>}]} {
    %c0_i32 = arith.constant 0 : i32
    %0 = arith.cmpi eq, %arg1, %c0_i32 : i32
    %1 = arith.extui %0 : i1 to i32
    %c0_i32_0 = arith.constant 0 : i32
    %2 = arith.cmpi ne, %1, %c0_i32_0 : i32
    scf.if %2 {
      %cst_15 = arith.constant 0xFF800000 : f32
      %22 = vector.broadcast %cst_15 : f32 to vector<8x128xf32>
      %c0_16 = arith.constant 0 : index
      %c0_17 = arith.constant 0 : index
      %23 = vector.load %arg6[%c0_16, %c0_17] : memref<8x128xf32, #tpu.memory_space<vmem>>, vector<8x128xf32>
      tpu.vector_store %arg6[%c0_16, %c0_17], %22 {strides = array<i32>} : memref<8x128xf32, #tpu.memory_space<vmem>>, vector<8x128xf32>,
      %cst_18 = arith.constant 0.000000e+00 : f32
      %24 = vector.broadcast %cst_18 : f32 to vector<8x128xf32>
      %c0_19 = arith.constant 0 : index
      %c0_20 = arith.constant 0 : index
      %25 = vector.load %arg7[%c0_19, %c0_20] : memref<8x128xf32, #tpu.memory_space<vmem>>, vector<8x128xf32>
      tpu.vector_store %arg7[%c0_19, %c0_20], %24 {strides = array<i32>} : memref<8x128xf32, #tpu.memory_space<vmem>>, vector<8x128xf32>,
    } else {
    }
    %c0 = arith.constant 0 : index
    %c0_1 = arith.constant 0 : index
    %3 = vector.load %arg2[%c0, %c0_1] : memref<8x32xf32, #tpu.memory_space<vmem>>, vector<8x32xf32>
    %c0_2 = arith.constant 0 : index
    %c0_3 = arith.constant 0 : index
    %4 = vector.load %arg3[%c0_2, %c0_3] : memref<128x32xf32, #tpu.memory_space<vmem>>, vector<128x32xf32>
    %cst = arith.constant dense<0.000000e+00> : vector<8x128xf32>
    %5 = tpu.matmul %3, %4, %cst {dimension_numbers = #tpu.dot_dimension_numbers<[1], [1], [0], [0], [0, 0, 1, 0], [], []>} : vector<8x32xf32>, vector<128x32xf32>, vector<8x128xf32> -> vector<8x128xf32>
    %cst_4 = arith.constant 2.000000e+01 : f32
    %6 = vector.broadcast %cst_4 : f32 to vector<8x128xf32>
    %7 = arith.mulf %5, %6 : vector<8x128xf32>
    %c0_5 = arith.constant 0 : index
    %c0_6 = arith.constant 0 : index
    %8 = vector.load %arg6[%c0_5, %c0_6] : memref<8x128xf32, #tpu.memory_space<vmem>>, vector<8x128xf32>
    %c0_7 = arith.constant 0 : index
    %c0_8 = arith.constant 0 : index
    %9 = vector.load %arg7[%c0_7, %c0_8] : memref<8x128xf32, #tpu.memory_space<vmem>>, vector<8x128xf32>
    %10 = arith.maximumf %8, %7 : vector<8x128xf32>
    %11 = arith.subf %8, %10 : vector<8x128xf32>
    %12 = math.exp %11 : vector<8x128xf32>
    %13 = arith.mulf %9, %12 : vector<8x128xf32>
    %14 = arith.subf %7, %10 : vector<8x128xf32>
    %15 = math.exp %14 : vector<8x128xf32>
    %16 = arith.addf %13, %15 : vector<8x128xf32>
    %c0_9 = arith.constant 0 : index
    %c0_10 = arith.constant 0 : index
    %17 = vector.load %arg6[%c0_9, %c0_10] : memref<8x128xf32, #tpu.memory_space<vmem>>, vector<8x128xf32>
    tpu.vector_store %arg6[%c0_9, %c0_10], %10 {strides = array<i32>} : memref<8x128xf32, #tpu.memory_space<vmem>>, vector<8x128xf32>,
    %c0_11 = arith.constant 0 : index
    %c0_12 = arith.constant 0 : index
    %18 = vector.load %arg7[%c0_11, %c0_12] : memref<8x128xf32, #tpu.memory_space<vmem>>, vector<8x128xf32>
    tpu.vector_store %arg7[%c0_11, %c0_12], %16 {strides = array<i32>} : memref<8x128xf32, #tpu.memory_space<vmem>>, vector<8x128xf32>,
    %c0_i32_13 = arith.constant 0 : i32
    %19 = arith.cmpi eq, %arg1, %c0_i32_13 : i32
    %20 = arith.extui %19 : i1 to i32
    %c0_i32_14 = arith.constant 0 : i32
    %21 = arith.cmpi ne, %20, %c0_i32_14 : i32
    scf.if %21 {
      %22 = vector.shape_cast %10 : vector<8x128xf32> to vector<1x8x128xf32>
      %c0_15 = arith.constant 0 : index
      %c0_16 = arith.constant 0 : index
      %c0_17 = arith.constant 0 : index
      %23 = vector.load %arg4[%c0_15, %c0_16, %c0_17] : memref<1x8x128xf32, #tpu.memory_space<vmem>>, vector<1x8x128xf32>
      tpu.vector_store %arg4[%c0_15, %c0_16, %c0_17], %22 {strides = array<i32>} : memref<1x8x128xf32, #tpu.memory_space<vmem>>, vector<1x8x128xf32>,
      %24 = vector.shape_cast %16 : vector<8x128xf32> to vector<1x8x128xf32>
      %c0_18 = arith.constant 0 : index
      %c0_19 = arith.constant 0 : index
      %c0_20 = arith.constant 0 : index
      %25 = vector.load %arg5[%c0_18, %c0_19, %c0_20] : memref<1x8x128xf32, #tpu.memory_space<vmem>>, vector<1x8x128xf32>
      tpu.vector_store %arg5[%c0_18, %c0_19, %c0_20], %24 {strides = array<i32>} : memref<1x8x128xf32, #tpu.memory_space<vmem>>, vector<1x8x128xf32>,
    } else {
    }
    return
  }
  func.func @transform_0(%arg0: i32, %arg1: i32) -> (i32, i32) {
    %c0_i32 = arith.constant 0 : i32
    %c0_i32_0 = arith.constant 0 : i32
    %c0_i32_1 = arith.constant 0 : i32
    return %c0_i32, %c0_i32_0 : i32, i32
  }
  func.func @transform_1(%arg0: i32, %arg1: i32) -> (i32, i32) {
    %c1_i32 = arith.constant 1 : i32
    %0 = arith.muli %arg0, %c1_i32 : i32
    %1 = arith.addi %0, %arg1 : i32
    %c0_i32 = arith.constant 0 : i32
    %c0_i32_0 = arith.constant 0 : i32
    return %1, %c0_i32 : i32, i32
  }
  func.func @transform_2(%arg0: i32, %arg1: i32) -> (i32, i32, i32) {
    %c0_i32 = arith.constant 0 : i32
    %c0_i32_0 = arith.constant 0 : i32
    %c0_i32_1 = arith.constant 0 : i32
    return %arg0, %c0_i32, %c0_i32_0 : i32, i32, i32
  }
  func.func @transform_3(%arg0: i32, %arg1: i32) -> (i32, i32, i32) {
    %c0_i32 = arith.constant 0 : i32
    %c0_i32_0 = arith.constant 0 : i32
    %c0_i32_1 = arith.constant 0 : i32
    return %arg0, %c0_i32, %c0_i32_0 : i32, i32, i32
  }
}

module attributes {stable_mosaic.version = 11 : i64} {
  func.func @_infonce_kernel(%arg0: i32, %arg1: i32, %arg2: memref<8x32xf32, #tpu.memory_space<vmem>>, %arg3: memref<128x32xf32, #tpu.memory_space<vmem>>, %arg4: memref<1x8x128xf32, #tpu.memory_space<vmem>>, %arg5: memref<1x8x128xf32, #tpu.memory_space<vmem>>, %arg6: memref<8x128xf32, #tpu.memory_space<vmem>>, %arg7: memref<8x128xf32, #tpu.memory_space<vmem>>) attributes {dimension_semantics = [#tpu.dimension_semantics<parallel>, #tpu.dimension_semantics<arbitrary>], iteration_bounds = array<i64: 1, 1>, scalar_prefetch = 0 : i64, scratch_operands = 2 : i64, tpu.core_type = #tpu.core_type<tc>, window_params = [{pipeline_mode = #tpu.pipeline_mode<synchronous>, transform_indices = @transform_0, window_bounds = array<i64: 8, 32>}, {transform_indices = @transform_1, window_bounds = array<i64: 128, 32>}, {transform_indices = @transform_2, window_bounds = array<i64: 1, 8, 128>}, {transform_indices = @transform_3, window_bounds = array<i64: 1, 8, 128>}]} {
    %c0_i32 = arith.constant 0 : i32
    %0 = arith.cmpi eq, %arg1, %c0_i32 : i32
    %1 = arith.extui %0 : i1 to i32
    %c0_i32_0 = arith.constant 0 : i32
    %2 = arith.cmpi ne, %1, %c0_i32_0 : i32
    scf.if %2 {
      %cst_15 = arith.constant 0xFF800000 : f32
      %22 = vector.broadcast %cst_15 : f32 to vector<8x128xf32>
      %c0_16 = arith.constant 0 : index
      %c0_17 = arith.constant 0 : index
      %23 = vector.load %arg6[%c0_16, %c0_17] : memref<8x128xf32, #tpu.memory_space<vmem>>, vector<8x128xf32>
      tpu.vector_store %arg6[%c0_16, %c0_17], %22 {strides = array<i32>} : memref<8x128xf32, #tpu.memory_space<vmem>>, vector<8x128xf32>,
      %cst_18 = arith.constant 0.000000e+00 : f32
      %24 = vector.broadcast %cst_18 : f32 to vector<8x128xf32>
      %c0_19 = arith.constant 0 : index
      %c0_20 = arith.constant 0 : index
      %25 = vector.load %arg7[%c0_19, %c0_20] : memref<8x128xf32, #tpu.memory_space<vmem>>, vector<8x128xf32>
      tpu.vector_store %arg7[%c0_19, %c0_20], %24 {strides = array<i32>} : memref<8x128xf32, #tpu.memory_space<vmem>>, vector<8x128xf32>,
    } else {
    }
    %c0 = arith.constant 0 : index
    %c0_1 = arith.constant 0 : index
    %3 = vector.load %arg2[%c0, %c0_1] : memref<8x32xf32, #tpu.memory_space<vmem>>, vector<8x32xf32>
    %c0_2 = arith.constant 0 : index
    %c0_3 = arith.constant 0 : index
    %4 = vector.load %arg3[%c0_2, %c0_3] : memref<128x32xf32, #tpu.memory_space<vmem>>, vector<128x32xf32>
    %cst = arith.constant dense<0.000000e+00> : vector<8x128xf32>
    %5 = tpu.matmul %3, %4, %cst {dimension_numbers = #tpu.dot_dimension_numbers<[1], [1], [0], [0], [0, 0, 1, 0], [], []>} : vector<8x32xf32>, vector<128x32xf32>, vector<8x128xf32> -> vector<8x128xf32>
    %cst_4 = arith.constant 2.000000e+01 : f32
    %6 = vector.broadcast %cst_4 : f32 to vector<8x128xf32>
    %7 = arith.mulf %5, %6 : vector<8x128xf32>
    %c0_5 = arith.constant 0 : index
    %c0_6 = arith.constant 0 : index
    %8 = vector.load %arg6[%c0_5, %c0_6] : memref<8x128xf32, #tpu.memory_space<vmem>>, vector<8x128xf32>
    %c0_7 = arith.constant 0 : index
    %c0_8 = arith.constant 0 : index
    %9 = vector.load %arg7[%c0_7, %c0_8] : memref<8x128xf32, #tpu.memory_space<vmem>>, vector<8x128xf32>
    %10 = arith.maximumf %8, %7 : vector<8x128xf32>
    %11 = arith.subf %8, %10 : vector<8x128xf32>
    %12 = math.exp %11 : vector<8x128xf32>
    %13 = arith.mulf %9, %12 : vector<8x128xf32>
    %14 = arith.subf %7, %10 : vector<8x128xf32>
    %15 = math.exp %14 : vector<8x128xf32>
    %16 = arith.addf %13, %15 : vector<8x128xf32>
    %c0_9 = arith.constant 0 : index
    %c0_10 = arith.constant 0 : index
    %17 = vector.load %arg6[%c0_9, %c0_10] : memref<8x128xf32, #tpu.memory_space<vmem>>, vector<8x128xf32>
    tpu.vector_store %arg6[%c0_9, %c0_10], %10 {strides = array<i32>} : memref<8x128xf32, #tpu.memory_space<vmem>>, vector<8x128xf32>,
    %c0_11 = arith.constant 0 : index
    %c0_12 = arith.constant 0 : index
    %18 = vector.load %arg7[%c0_11, %c0_12] : memref<8x128xf32, #tpu.memory_space<vmem>>, vector<8x128xf32>
    tpu.vector_store %arg7[%c0_11, %c0_12], %16 {strides = array<i32>} : memref<8x128xf32, #tpu.memory_space<vmem>>, vector<8x128xf32>,
    %c0_i32_13 = arith.constant 0 : i32
    %19 = arith.cmpi eq, %arg1, %c0_i32_13 : i32
    %20 = arith.extui %19 : i1 to i32
    %c0_i32_14 = arith.constant 0 : i32
    %21 = arith.cmpi ne, %20, %c0_i32_14 : i32
    scf.if %21 {
      %22 = vector.shape_cast %10 : vector<8x128xf32> to vector<1x8x128xf32>
      %c0_15 = arith.constant 0 : index
      %c0_16 = arith.constant 0 : index
      %c0_17 = arith.constant 0 : index
      %23 = vector.load %arg4[%c0_15, %c0_16, %c0_17] : memref<1x8x128xf32, #tpu.memory_space<vmem>>, vector<1x8x128xf32>
      tpu.vector_store %arg4[%c0_15, %c0_16, %c0_17], %22 {strides = array<i32>} : memref<1x8x128xf32, #tpu.memory_space<vmem>>, vector<1x8x128xf32>,
      %24 = vector.shape_cast %16 : vector<8x128xf32> to vector<1x8x128xf32>
      %c0_18 = arith.constant 0 : index
      %c0_19 = arith.constant 0 : index
      %c0_20 = arith.constant 0 : index
      %25 = vector.load %arg5[%c0_18, %c0_19, %c0_20] : memref<1x8x128xf32, #tpu.memory_space<vmem>>, vector<1x8x128xf32>
      tpu.vector_store %arg5[%c0_18, %c0_19, %c0_20], %24 {strides = array<i32>} : memref<1x8x128xf32, #tpu.memory_space<vmem>>, vector<1x8x128xf32>,
    } else {
    }
    return
  }
  func.func @transform_0(%arg0: i32, %arg1: i32) -> (i32, i32) {
    %c0_i32 = arith.constant 0 : i32
    %c0_i32_0 = arith.constant 0 : i32
    %c0_i32_1 = arith.constant 0 : i32
    return %c0_i32, %c0_i32_0 : i32, i32
  }
  func.func @transform_1(%arg0: i32, %arg1: i32) -> (i32, i32) {
    %c1_i32 = arith.constant 1 : i32
    %0 = arith.muli %arg0, %c1_i32 : i32
    %1 = arith.addi %0, %arg1 : i32
    %c0_i32 = arith.constant 0 : i32
    %c0_i32_0 = arith.constant 0 : i32
    return %1, %c0_i32 : i32, i32
  }
  func.func @transform_2(%arg0: i32, %arg1: i32) -> (i32, i32, i32) {
    %c0_i32 = arith.constant 0 : i32
    %c0_i32_0 = arith.constant 0 : i32
    %c0_i32_1 = arith.constant 0 : i32
    return %arg0, %c0_i32, %c0_i32_0 : i32, i32, i32
  }
  func.func @transform_3(%arg0: i32, %arg1: i32) -> (i32, i32, i32) {
    %c0_i32 = arith.constant 0 : i32
    %c0_i32_0 = arith.constant 0 : i32
    %c0_i32_1 = arith.constant 0 : i32
    return %arg0, %c0_i32, %c0_i32_0 : i32, i32, i32
  }
}

</mosaic_0001>

<bundles_post_ra>
// kernel: tpu_custom_call.1
= control target key start
LH: loop header
LB: loop body
LE: loop exit
PB: predicated region body
PF: predicated region fallthrough
CT: control target
= control target key end

     0   :  { %9 = vsyncpa [#allocation5], 0  ;;  %vm60_vm0 = vcmask 261120   ;;  %v356_v1 = vmov 0.0   ;;  %vm357_vm1 = vmmov 0   ;;  %s454_s0 = inlined_call_operand.vmem [shape: f32[8,32], index: 0, kind: input, shape index: {}]   ;;  %s455_s1 = inlined_call_operand.vmem [shape: f32[128,32], index: 1, kind: input, shape index: {}]   ;;  %s456_s2 = inlined_call_operand.hbm [shape: f32[1,8,128], index: 2, kind: output, shape index: {0}]   ;;  %s457_s3 = inlined_call_operand.hbm [shape: f32[1,8,128], index: 3, kind: output, shape index: {1}]  }
   0x1   :  { %v59_v0 = vld [vmem:[%s455_s1 + $0x78] sm:$0xff]  ;;  %269 = vmatprep.subr.mxu0 %v356_v1  ;;  %301 = vmatprep.mubr.msk.f32.mxu0 %vm357_vm1, %v356_v1  ;;  %v58_v2 = vld [vmem:[%s455_s1 + $0x70] sm:$0xff] }
   0x2   :  { %270 = vmatpush3.xpose.msk.msra.mxu0 %vm60_vm0, %v59_v0 }
   0x3   :  { %271 = vmatprep.subr.mxu0 %v356_v1 }
   0x4   :  { %10 = vsyncpa [#allocation7], 0  ;;  %v57_v3 = vld [vmem:[%s455_s1 + $0x68] sm:$0xff]  ;;  %v56_v4 = vld [vmem:[%s455_s1 + $0x60] sm:$0xff]  ;;  %s358_s19 = smov [#allocation4]  }
   0x5   :  { %v55_v5 = vld [vmem:[%s455_s1 + $0x58] sm:$0xff]  ;;  %v54_v6 = vld [vmem:[%s455_s1 + $0x50] sm:$0xff]  ;;  %v53_v7 = vld [vmem:[%s455_s1 + $0x48] sm:$0xff]  ;;  %s207_s20 = sshll.u32 %s358_s19, 4  ;;  %s208_s20 = int_to_ptr.vmem [resolvable:$true] %s207_s20 }
   0x6   :  { %272 = vmatpush3.xpose.msk.msra.mxu0 %vm60_vm0, %v58_v2  ;;  %v52_v8 = vld [vmem:[%s455_s1 + $0x40] sm:$0xff]  ;;  %v51_v9 = vld [vmem:[%s455_s1 + $0x38] sm:$0xff]  ;;  %v50_v10 = vld [vmem:[%s455_s1 + $0x30] sm:$0xff]  ;;  %s312_s21 = scalar_lea.vmem %s208_s20, 128  ;;  %p317_p1 = scmp.lt.s32.totalorder %s208_s20, %s208_s20 }
   0x7   :  { %273 = vmatprep.subr.mxu0 %v356_v1  ;;  %v49_v11 = vld [vmem:[%s455_s1 + $0x28] sm:$0xff]  ;;  %v48_v12 = vld [vmem:[%s455_s1 + $0x20] sm:$0xff]  ;;  %v47_v13 = vld [vmem:[%s455_s1 + $0x18] sm:$0xff]  ;;  %p313_p0 = scmp.ne.s32.totalorder %s208_s20, %s312_s21  ;;  %p318_p2 = scmp.lt.s32.totalorder %s312_s21, %s312_s21 }
   0x8   :  { %v46_v14 = vld [vmem:[%s455_s1 + $0x10] sm:$0xff]  ;;  %v45_v15 = vld [vmem:[%s455_s1 + $0x8] sm:$0xff]  ;;  %v44_v16 = vld [vmem:[%s455_s1] sm:$0xff] }
   0x9   :  { %v43_v17 = vld [vmem:[%s454_s0] sm:$0xff]  ;;  %p319_p3 = por %p318_p2, %p317_p1 }
   0xa   :  { %274 = vmatpush3.xpose.msk.msra.mxu0 %vm60_vm0, %v57_v3 }
   0xb   :  { %275 = vmatprep.subr.mxu0 %v356_v1  ;;  %p320_p4 = pnand %p319_p3, %p313_p0 }
   0xe   :  { %276 = vmatpush3.xpose.msk.msra.mxu0 %vm60_vm0, %v56_v4 }
   0xf   :  { %277 = vmatprep.subr.mxu0 %v356_v1 }
  0x12   :  { %278 = vmatpush3.xpose.msk.msra.mxu0 %vm60_vm0, %v55_v5 }
  0x13   :  { %279 = vmatprep.subr.mxu0 %v356_v1 }
  0x16   :  { %280 = vmatpush3.xpose.msk.msra.mxu0 %vm60_vm0, %v54_v6 }
  0x17   :  { %281 = vmatprep.subr.mxu0 %v356_v1 }
  0x1a   :  { %282 = vmatpush3.xpose.msk.msra.mxu0 %vm60_vm0, %v53_v7 }
  0x1b   :  { %283 = vmatprep.subr.mxu0 %v356_v1 }
  0x1e   :  { %284 = vmatpush3.xpose.msk.msra.mxu0 %vm60_vm0, %v52_v8 }
  0x1f   :  { %285 = vmatprep.subr.mxu0 %v356_v1 }
  0x22   :  { %286 = vmatpush3.xpose.msk.msra.mxu0 %vm60_vm0, %v51_v9 }
  0x23   :  { %287 = vmatprep.subr.mxu0 %v356_v1 }
  0x26   :  { %288 = vmatpush3.xpose.msk.msra.mxu0 %vm60_vm0, %v50_v10 }
  0x27   :  { %289 = vmatprep.subr.mxu0 %v356_v1 }
  0x2a   :  { %290 = vmatpush3.xpose.msk.msra.mxu0 %vm60_vm0, %v49_v11 }
  0x2b   :  { %291 = vmatprep.subr.mxu0 %v356_v1 }
  0x2e   :  { %292 = vmatpush3.xpose.msk.msra.mxu0 %vm60_vm0, %v48_v12 }
  0x2f   :  { %293 = vmatprep.subr.mxu0 %v356_v1 }
  0x32   :  { %294 = vmatpush3.xpose.msk.msra.mxu0 %vm60_vm0, %v47_v13 }
  0x33   :  { %295 = vmatprep.subr.mxu0 %v356_v1 }
  0x36   :  { %296 = vmatpush3.xpose.msk.msra.mxu0 %vm60_vm0, %v46_v14 }
  0x37   :  { %297 = vmatprep.subr.mxu0 %v356_v1 }
  0x3a   :  { %298 = vmatpush3.xpose.msk.msra.mxu0 %vm60_vm0, %v45_v15 }
  0x3b   :  { %299 = vmatprep.subr.mxu0 %v356_v1 }
  0x3e   :  { %300 = vmatpush3.xpose.msk.msra.mxu0 %vm60_vm0, %v44_v16 }
  0x41   :  { %302 = vmatmul.mubr.msk.f32.vlgmr.msra.gmra.mxu0 %vm60_vm0, %v43_v17 }
 0x101   :  { %v178_v18 = vpop.f32.mrf.mxu0 }
 0x102   :  { %v182_v19 = vmul.f32 20.0, %v178_v18 }
 0x103   :  { %v303_v20 = vpop.f32.mrf.mxu0 }
 0x104   :  { %v186_v21 = vsub.f32 -inf, %v182_v19  ;;  %v190_v22 = vsub.f32 %v182_v19, %v182_v19  ;;  %199 = vst [vmem:[#allocation4] sm:$0xff] %v182_v19 }
 0x105   :  { %323 = shalt.err (!%p320_p4)
}
 0x106   :  { %210 = dma.vmem_to_hbm [thread:$0]  %s208_s20, 128, %s456_s2, [#allocation5]   ;;  %v187_v23 = vmul.f32 1.442695, %v186_v21  ;;  %v191_v24 = vmul.f32 1.442695, %v190_v22 }
 0x107   :  { %s359_s22 = smov [#allocation6]  }
 0x108   :  { %308 = vpow2.f32 %v187_v23  ;;  %s217_s23 = sshll.u32 %s359_s22, 4  ;;  %s218_s23 = int_to_ptr.vmem [resolvable:$true] %s217_s23 }
 0x109   :  { %310 = vpow2.f32 %v191_v24  ;;  %s332_s24 = scalar_lea.vmem %s218_s23, 128  ;;  %p337_p6 = scmp.lt.s32.totalorder %s218_s23, %s218_s23 }
 0x10a   :  { %p333_p5 = scmp.ne.s32.totalorder %s218_s23, %s332_s24  ;;  %p338_p7 = scmp.lt.s32.totalorder %s332_s24, %s332_s24 }
 0x10c   :  { %p339_p8 = por %p338_p7, %p337_p6 }
 0x10e   :  { %p340_p9 = pnand %p339_p8, %p333_p5 }
 0x115   :  { %v309_v25 = vpop.eup %308 }
 0x116   :  { %v189_v26 = vmul.f32 0.0, %v309_v25  ;;  %v311_v27 = vpop.eup %310 }
 0x118   :  { %v193_v28 = vadd.f32 %v311_v27, %v189_v26 }
 0x11a   :  { %200 = vst [vmem:[#allocation6] sm:$0xff] %v193_v28 }
 0x11b   :  { %343 = shalt.err (!%p340_p9)
}
 0x11c   :  { %220 = dma.vmem_to_hbm [thread:$0]  %s218_s23, 128, %s457_s3, [#allocation7]  }
 0x11d   :  { %352 = dma.done.wait [#allocation5], 128  }
 0x11e   :  { %353 = vsyncadd [#allocation5], 4294967168 }
 0x11f   :  { %354 = dma.done.wait [#allocation7], 128  }
 0x120   :  { %355 = vsyncadd [#allocation7], 4294967168 }
 0x121   :  { %227 = vsyncpa [#allocation5], 1 }
 0x122   :  { %228 = vsyncpa [#allocation7], 1 }

// kernel: tpu_custom_call.1
= control target key start
LH: loop header
LB: loop body
LE: loop exit
PB: predicated region body
PF: predicated region fallthrough
CT: control target
= control target key end

     0   :  { %9 = vsyncpa [#allocation5], 0  ;;  %vm60_vm0 = vcmask 261120   ;;  %v356_v1 = vmov 0.0   ;;  %vm357_vm1 = vmmov 0   ;;  %s454_s0 = inlined_call_operand.vmem [shape: f32[8,32], index: 0, kind: input, shape index: {}]   ;;  %s455_s1 = inlined_call_operand.vmem [shape: f32[128,32], index: 1, kind: input, shape index: {}]   ;;  %s456_s2 = inlined_call_operand.hbm [shape: f32[1,8,128], index: 2, kind: output, shape index: {0}]   ;;  %s457_s3 = inlined_call_operand.hbm [shape: f32[1,8,128], index: 3, kind: output, shape index: {1}]  }
   0x1   :  { %v59_v0 = vld [vmem:[%s455_s1 + $0x78] sm:$0xff]  ;;  %269 = vmatprep.subr.mxu0 %v356_v1  ;;  %301 = vmatprep.mubr.msk.f32.mxu0 %vm357_vm1, %v356_v1  ;;  %v58_v2 = vld [vmem:[%s455_s1 + $0x70] sm:$0xff] }
   0x2   :  { %270 = vmatpush3.xpose.msk.msra.mxu0 %vm60_vm0, %v59_v0 }
   0x3   :  { %271 = vmatprep.subr.mxu0 %v356_v1 }
   0x4   :  { %10 = vsyncpa [#allocation7], 0  ;;  %v57_v3 = vld [vmem:[%s455_s1 + $0x68] sm:$0xff]  ;;  %v56_v4 = vld [vmem:[%s455_s1 + $0x60] sm:$0xff]  ;;  %s358_s19 = smov [#allocation4]  }
   0x5   :  { %v55_v5 = vld [vmem:[%s455_s1 + $0x58] sm:$0xff]  ;;  %v54_v6 = vld [vmem:[%s455_s1 + $0x50] sm:$0xff]  ;;  %v53_v7 = vld [vmem:[%s455_s1 + $0x48] sm:$0xff]  ;;  %s207_s20 = sshll.u32 %s358_s19, 4  ;;  %s208_s20 = int_to_ptr.vmem [resolvable:$true] %s207_s20 }
   0x6   :  { %272 = vmatpush3.xpose.msk.msra.mxu0 %vm60_vm0, %v58_v2  ;;  %v52_v8 = vld [vmem:[%s455_s1 + $0x40] sm:$0xff]  ;;  %v51_v9 = vld [vmem:[%s455_s1 + $0x38] sm:$0xff]  ;;  %v50_v10 = vld [vmem:[%s455_s1 + $0x30] sm:$0xff]  ;;  %s312_s21 = scalar_lea.vmem %s208_s20, 128  ;;  %p317_p1 = scmp.lt.s32.totalorder %s208_s20, %s208_s20 }
   0x7   :  { %273 = vmatprep.subr.mxu0 %v356_v1  ;;  %v49_v11 = vld [vmem:[%s455_s1 + $0x28] sm:$0xff]  ;;  %v48_v12 = vld [vmem:[%s455_s1 + $0x20] sm:$0xff]  ;;  %v47_v13 = vld [vmem:[%s455_s1 + $0x18] sm:$0xff]  ;;  %p313_p0 = scmp.ne.s32.totalorder %s208_s20, %s312_s21  ;;  %p318_p2 = scmp.lt.s32.totalorder %s312_s21, %s312_s21 }
   0x8   :  { %v46_v14 = vld [vmem:[%s455_s1 + $0x10] sm:$0xff]  ;;  %v45_v15 = vld [vmem:[%s455_s1 + $0x8] sm:$0xff]  ;;  %v44_v16 = vld [vmem:[%s455_s1] sm:$0xff] }
   0x9   :  { %v43_v17 = vld [vmem:[%s454_s0] sm:$0xff]  ;;  %p319_p3 = por %p318_p2, %p317_p1 }
   0xa   :  { %274 = vmatpush3.xpose.msk.msra.mxu0 %vm60_vm0, %v57_v3 }
   0xb   :  { %275 = vmatprep.subr.mxu0 %v356_v1  ;;  %p320_p4 = pnand %p319_p3, %p313_p0 }
   0xe   :  { %276 = vmatpush3.xpose.msk.msra.mxu0 %vm60_vm0, %v56_v4 }
   0xf   :  { %277 = vmatprep.subr.mxu0 %v356_v1 }
  0x12   :  { %278 = vmatpush3.xpose.msk.msra.mxu0 %vm60_vm0, %v55_v5 }
  0x13   :  { %279 = vmatprep.subr.mxu0 %v356_v1 }
  0x16   :  { %280 = vmatpush3.xpose.msk.msra.mxu0 %vm60_vm0, %v54_v6 }
  0x17   :  { %281 = vmatprep.subr.mxu0 %v356_v1 }
  0x1a   :  { %282 = vmatpush3.xpose.msk.msra.mxu0 %vm60_vm0, %v53_v7 }
  0x1b   :  { %283 = vmatprep.subr.mxu0 %v356_v1 }
  0x1e   :  { %284 = vmatpush3.xpose.msk.msra.mxu0 %vm60_vm0, %v52_v8 }
  0x1f   :  { %285 = vmatprep.subr.mxu0 %v356_v1 }
  0x22   :  { %286 = vmatpush3.xpose.msk.msra.mxu0 %vm60_vm0, %v51_v9 }
  0x23   :  { %287 = vmatprep.subr.mxu0 %v356_v1 }
  0x26   :  { %288 = vmatpush3.xpose.msk.msra.mxu0 %vm60_vm0, %v50_v10 }
  0x27   :  { %289 = vmatprep.subr.mxu0 %v356_v1 }
  0x2a   :  { %290 = vmatpush3.xpose.msk.msra.mxu0 %vm60_vm0, %v49_v11 }
  0x2b   :  { %291 = vmatprep.subr.mxu0 %v356_v1 }
  0x2e   :  { %292 = vmatpush3.xpose.msk.msra.mxu0 %vm60_vm0, %v48_v12 }
  0x2f   :  { %293 = vmatprep.subr.mxu0 %v356_v1 }
  0x32   :  { %294 = vmatpush3.xpose.msk.msra.mxu0 %vm60_vm0, %v47_v13 }
  0x33   :  { %295 = vmatprep.subr.mxu0 %v356_v1 }
  0x36   :  { %296 = vmatpush3.xpose.msk.msra.mxu0 %vm60_vm0, %v46_v14 }
  0x37   :  { %297 = vmatprep.subr.mxu0 %v356_v1 }
  0x3a   :  { %298 = vmatpush3.xpose.msk.msra.mxu0 %vm60_vm0, %v45_v15 }
  0x3b   :  { %299 = vmatprep.subr.mxu0 %v356_v1 }
  0x3e   :  { %300 = vmatpush3.xpose.msk.msra.mxu0 %vm60_vm0, %v44_v16 }
  0x41   :  { %302 = vmatmul.mubr.msk.f32.vlgmr.msra.gmra.mxu0 %vm60_vm0, %v43_v17 }
 0x101   :  { %v178_v18 = vpop.f32.mrf.mxu0 }
 0x102   :  { %v182_v19 = vmul.f32 20.0, %v178_v18 }
 0x103   :  { %v303_v20 = vpop.f32.mrf.mxu0 }
 0x104   :  { %v186_v21 = vsub.f32 -inf, %v182_v19  ;;  %v190_v22 = vsub.f32 %v182_v19, %v182_v19  ;;  %199 = vst [vmem:[#allocation4] sm:$0xff] %v182_v19 }
 0x105   :  { %323 = shalt.err (!%p320_p4)
}
 0x106   :  { %210 = dma.vmem_to_hbm [thread:$0]  %s208_s20, 128, %s456_s2, [#allocation5]   ;;  %v187_v23 = vmul.f32 1.442695, %v186_v21  ;;  %v191_v24 = vmul.f32 1.442695, %v190_v22 }
 0x107   :  { %s359_s22 = smov [#allocation6]  }
 0x108   :  { %308 = vpow2.f32 %v187_v23  ;;  %s217_s23 = sshll.u32 %s359_s22, 4  ;;  %s218_s23 = int_to_ptr.vmem [resolvable:$true] %s217_s23 }
 0x109   :  { %310 = vpow2.f32 %v191_v24  ;;  %s332_s24 = scalar_lea.vmem %s218_s23, 128  ;;  %p337_p6 = scmp.lt.s32.totalorder %s218_s23, %s218_s23 }
 0x10a   :  { %p333_p5 = scmp.ne.s32.totalorder %s218_s23, %s332_s24  ;;  %p338_p7 = scmp.lt.s32.totalorder %s332_s24, %s332_s24 }
 0x10c   :  { %p339_p8 = por %p338_p7, %p337_p6 }
 0x10e   :  { %p340_p9 = pnand %p339_p8, %p333_p5 }
 0x115   :  { %v309_v25 = vpop.eup %308 }
 0x116   :  { %v189_v26 = vmul.f32 0.0, %v309_v25  ;;  %v311_v27 = vpop.eup %310 }
 0x118   :  { %v193_v28 = vadd.f32 %v311_v27, %v189_v26 }
 0x11a   :  { %200 = vst [vmem:[#allocation6] sm:$0xff] %v193_v28 }
 0x11b   :  { %343 = shalt.err (!%p340_p9)
}
 0x11c   :  { %220 = dma.vmem_to_hbm [thread:$0]  %s218_s23, 128, %s457_s3, [#allocation7]  }
 0x11d   :  { %352 = dma.done.wait [#allocation5], 128  }
 0x11e   :  { %353 = vsyncadd [#allocation5], 4294967168 }
 0x11f   :  { %354 = dma.done.wait [#allocation7], 128  }
 0x120   :  { %355 = vsyncadd [#allocation7], 4294967168 }
 0x121   :  { %227 = vsyncpa [#allocation5], 1 }
 0x122   :  { %228 = vsyncpa [#allocation7], 1 }

</bundles_post_ra>
